<compile_context>
chip_gen: v7x
topology: tpu7x:2x2x1
jax: 0.10.0
libtpu: 0.0.40
codegen_flags: <defaults>
</compile_context>

<pallas_src>
import functools

import jax
import jax.numpy as jnp
from jax.experimental import pallas as pl
from jax.experimental.pallas import tpu as pltpu

_LANES = 128
_SUBLANES = 8
# 2048 rows * 128 lanes * 4B = 1 MiB per plane per tile
#  -> 3 planes * 2 pipeline buffers = ~6 MiB VMEM: fits the default scoped
#     VMEM limit on v5e (16 MiB), v6e (32 MiB) and v7x (32 MiB).
_MAX_TILE_ROWS = 2048


def _cdiv(a, b):
    return -(-a // b)


def _round_up(a, b):
    return _cdiv(a, b) * b


def _masked_mse_kernel(x_ref, t0_ref, t1_ref, *out_refs, lambd, need_mask_sum):
    """One row-tile: write per-tile (8, 128) vector partial sums."""
    if need_mask_sum:
        loss_part_ref, mask_part_ref = out_refs
    else:
        (loss_part_ref,) = out_refs
        mask_part_ref = None

    x = x_ref[...].astype(jnp.float32)     # (TR, 128)
    t = t0_ref[...].astype(jnp.float32)    # (TR, 128)
    diff = x - t
    sq = diff * diff                       # squared error (MSE, not MAE)
    mask = jnp.where(t1_ref[...] != 0,
                     jnp.float32(lambd), jnp.float32(1.0 - lambd))
    masked = sq * mask

    tr = masked.shape[0]                   # static; multiple of 8
    # Fold rows in groups of 8 sublanes: pure vreg-wise VPU adds, no scalar
    # cross-lane reduction inside the hot loop.
    loss_part_ref[0] = jnp.sum(
        masked.reshape(tr // _SUBLANES, _SUBLANES, _LANES), axis=0)
    if need_mask_sum:
        mask_part_ref[0] = jnp.sum(
            mask.reshape(tr // _SUBLANES, _SUBLANES, _LANES), axis=0)


def masked_mse_loss(input_nchw, target_nchw, lambd):
    """Pallas implementation of MaskedMSELoss.forward."""
    B, C, H, W = input_nchw.shape
    assert target_nchw.shape[0] == B and target_nchw.shape[2:] == (H, W)
    assert target_nchw.shape[1] >= 2, "target needs value + mask channels"

    lambd = float(lambd)
    need_mask_sum = abs(lambd - 1.0) < 1e-05   # static branch, like PyTorch

    n_elems = B * H * W
    # Slice out only the 3 planes the loss actually reads.
    x0 = input_nchw[:, 0, :, :].reshape(-1)
    t0 = target_nchw[:, 0, :, :].reshape(-1)
    t1 = target_nchw[:, 1, :, :].reshape(-1)

    # Lane-dense packing: (rows, 128) with rows a multiple of 8.
    rows = _round_up(_cdiv(n_elems, _LANES), _SUBLANES)
    if rows <= _MAX_TILE_ROWS:
        tile_rows, grid = rows, 1
    else:
        tile_rows = _MAX_TILE_ROWS
        grid = _cdiv(rows, tile_rows)
        rows = tile_rows * grid
    pad = rows * _LANES - n_elems

    def _slab(v):
        return jnp.pad(v, (0, pad)).reshape(rows, _LANES)

    x0s, t0s, t1s = _slab(x0), _slab(t0), _slab(t1)

    in_spec = pl.BlockSpec((tile_rows, _LANES), lambda i: (i, 0))
    out_spec = pl.BlockSpec((1, _SUBLANES, _LANES), lambda i: (i, 0, 0))
    out_shape = jax.ShapeDtypeStruct((grid, _SUBLANES, _LANES), jnp.float32)

    if need_mask_sum:
        out_shapes = (out_shape, out_shape)
        out_specs = (out_spec, out_spec)
    else:
        out_shapes = out_shape
        out_specs = out_spec

    kernel = functools.partial(
        _masked_mse_kernel, lambd=lambd, need_mask_sum=need_mask_sum)

    result = pl.pallas_call(
        kernel,
        out_shape=out_shapes,
        grid_spec=pltpu.PrefetchScalarGridSpec(
            num_scalar_prefetch=0,
            grid=(grid,),
            in_specs=[in_spec, in_spec, in_spec],
            out_specs=out_specs,
        ),
        compiler_params=pltpu.CompilerParams(
            # Each grid step writes its own partial-sum block -> fully
            # parallel (both TensorCores on v7x can stream HBM).
            dimension_semantics=("parallel",),
        ),
    )(x0s, t0s, t1s)

    if need_mask_sum:
        loss_part, mask_part = result
        # Padded elements have t1 == 0, so each contributed (1 - lambd) to the
        # mask sum; remove that static amount (it's 0 when lambd == 1.0).
        sum_mask = jnp.sum(mask_part) - jnp.float32(pad) * jnp.float32(1.0 - lambd)
        return jnp.sum(loss_part) / sum_mask
    else:
        # torch.mean over the (B, H, W) masked-loss tensor (pad adds 0 loss).
        return jnp.sum(result) / jnp.float32(n_elems)


def _reference(input_nchw, target_nchw, lambd):
    se = (input_nchw[:, 0, :, :] - target_nchw[:, 0, :, :]) ** 2
    mask = jnp.where(target_nchw[:, 1, :, :] != 0, lambd, 1.0 - lambd)
    masked = se * mask
    if abs(float(lambd) - 1.0) < 1e-05:
        return jnp.sum(masked) / jnp.sum(mask)
    return jnp.mean(masked)


if __name__ == "__main__":
    key = jax.random.PRNGKey(0)
    k1, k2, k3 = jax.random.split(key, 3)

    B, C, H, W = 2, 4, 16, 16
    x = jax.random.normal(k1, (B, C, H, W), dtype=jnp.float32)
    t_val = jax.random.normal(k2, (B, 1, H, W), dtype=jnp.float32)
    # Mask channel: ~half zeros, half nonzero.
    t_mask = (jax.random.uniform(k3, (B, 1, H, W)) > 0.5).astype(jnp.float32)
    t_rest = jnp.zeros((B, C - 2, H, W), dtype=jnp.float32)
    t = jnp.concatenate([t_val, t_mask, t_rest], axis=1)

    ok = True
    for lambd in (0.7, 1.0):  # exercise both branches (mean vs sum/sum(mask))
        out = jax.block_until_ready(masked_mse_loss(x, t, lambd))
        ref = jax.block_until_ready(_reference(x, t, lambd))
        if not jnp.allclose(out, ref, rtol=1e-5, atol=1e-5):
            ok = False
            print(f"MISMATCH lambd={lambd}: kernel={out} ref={ref}")

    if ok:
        print("KERNEL_OK")
</pallas_src>

<mosaic_0001>
module attributes {stable_mosaic.version = 11 : i64} {
  func.func @_masked_mse_kernel(%arg0: i32, %arg1: memref<8x128xf32, #tpu.memory_space<vmem>>, %arg2: memref<8x128xf32, #tpu.memory_space<vmem>>, %arg3: memref<8x128xf32, #tpu.memory_space<vmem>>, %arg4: memref<1x8x128xf32, #tpu.memory_space<vmem>>) attributes {dimension_semantics = [#tpu.dimension_semantics<parallel>], iteration_bounds = array<i64: 1>, scalar_prefetch = 0 : i64, scratch_operands = 0 : i64, tpu.core_type = #tpu.core_type<tc>, window_params = [{transform_indices = @transform_0, window_bounds = array<i64: 8, 128>}, {transform_indices = @transform_1, window_bounds = array<i64: 8, 128>}, {transform_indices = @transform_2, window_bounds = array<i64: 8, 128>}, {transform_indices = @transform_3, window_bounds = array<i64: 1, 8, 128>}]} {
    %c0 = arith.constant 0 : index
    %c0_0 = arith.constant 0 : index
    %0 = vector.load %arg1[%c0, %c0_0] : memref<8x128xf32, #tpu.memory_space<vmem>>, vector<8x128xf32>
    %c0_1 = arith.constant 0 : index
    %c0_2 = arith.constant 0 : index
    %1 = vector.load %arg2[%c0_1, %c0_2] : memref<8x128xf32, #tpu.memory_space<vmem>>, vector<8x128xf32>
    %2 = arith.subf %0, %1 : vector<8x128xf32>
    %3 = arith.mulf %2, %2 : vector<8x128xf32>
    %c0_3 = arith.constant 0 : index
    %c0_4 = arith.constant 0 : index
    %4 = vector.load %arg3[%c0_3, %c0_4] : memref<8x128xf32, #tpu.memory_space<vmem>>, vector<8x128xf32>
    %cst = arith.constant 0.000000e+00 : f32
    %5 = vector.broadcast %cst : f32 to vector<8x128xf32>
    %6 = arith.cmpf one, %4, %5 : vector<8x128xf32>
    %cst_5 = arith.constant 0.699999988 : f32
    %cst_6 = arith.constant 3.000000e-01 : f32
    %7 = vector.broadcast %cst_5 : f32 to vector<8x128xf32>
    %8 = vector.broadcast %cst_6 : f32 to vector<8x128xf32>
    %9 = arith.select %6, %7, %8 : vector<8x128xi1>, vector<8x128xf32>
    %10 = arith.mulf %3, %9 : vector<8x128xf32>
    %11 = vector.shape_cast %10 : vector<8x128xf32> to vector<1x8x128xf32>
    %cst_7 = arith.constant dense<0.000000e+00> : vector<8x128xf32>
    %12 = vector.multi_reduction <add>, %11, %cst_7 [0] : vector<1x8x128xf32> to vector<8x128xf32>
    %c0_8 = arith.constant 0 : index
    %c0_9 = arith.constant 0 : index
    %c0_10 = arith.constant 0 : index
    %13 = vector.load %arg4[%c0_8, %c0_9, %c0_10] : memref<1x8x128xf32, #tpu.memory_space<vmem>>, vector<1x8x128xf32>
    %14 = vector.shape_cast %13 : vector<1x8x128xf32> to vector<8x128xf32>
    %15 = vector.shape_cast %12 : vector<8x128xf32> to vector<1x8x128xf32>
    tpu.vector_store %arg4[%c0_8, %c0_9, %c0_10], %15 {strides = array<i32>} : memref<1x8x128xf32, #tpu.memory_space<vmem>>, vector<1x8x128xf32>,
    return
  }
  func.func @transform_0(%arg0: i32) -> (i32, i32) {
    %c0_i32 = arith.constant 0 : i32
    %c0_i32_0 = arith.constant 0 : i32
    return %arg0, %c0_i32 : i32, i32
  }
  func.func @transform_1(%arg0: i32) -> (i32, i32) {
    %c0_i32 = arith.constant 0 : i32
    %c0_i32_0 = arith.constant 0 : i32
    return %arg0, %c0_i32 : i32, i32
  }
  func.func @transform_2(%arg0: i32) -> (i32, i32) {
    %c0_i32 = arith.constant 0 : i32
    %c0_i32_0 = arith.constant 0 : i32
    return %arg0, %c0_i32 : i32, i32
  }
  func.func @transform_3(%arg0: i32) -> (i32, i32, i32) {
    %c0_i32 = arith.constant 0 : i32
    %c0_i32_0 = arith.constant 0 : i32
    %c0_i32_1 = arith.constant 0 : i32
    return %arg0, %c0_i32, %c0_i32_0 : i32, i32, i32
  }
}

</mosaic_0001>

<bundles_post_ra>
// kernel: tpu_custom_call.1
= control target key start
LH: loop header
LB: loop body
LE: loop exit
PB: predicated region body
PF: predicated region fallthrough
CT: control target
= control target key end

     0   :  { %8 = vsyncpa [#allocation3], 0  ;;  %s248_s0 = inlined_call_operand.hbm [shape: f32[8,128], index: 0, kind: input, shape index: {}]   ;;  %s249_s1 = inlined_call_operand.hbm [shape: f32[8,128], index: 1, kind: input, shape index: {}]   ;;  %s250_s2 = inlined_call_operand.hbm [shape: f32[8,128], index: 2, kind: input, shape index: {}]   ;;  %s251_s3 = inlined_call_operand.hbm [shape: f32[1,8,128], index: 3, kind: output, shape index: {}]  }
   0x1   :  { %9 = vsyncpa [#allocation6], 0 }
   0x2   :  { %10 = vsyncpa [#allocation4], 0  ;;  %s175_s12 = smov [#allocation5]   ;;  %s176_s14 = smov [#allocation2]  }
   0x3   :  { %s27_s13 = sshll.u32 %s175_s12, 4  ;;  %s17_s15 = sshll.u32 %s176_s14, 4  ;;  %s28_s13 = int_to_ptr.vmem [resolvable:$true] %s27_s13  ;;  %s18_s15 = int_to_ptr.vmem [resolvable:$true] %s17_s15 }
   0x4   :  { %s81_s18 = scalar_lea.hbm %s249_s1, 128 }
   0x5   :  { %p82_p0 = scmp.ne.s32.totalorder %s249_s1, %s81_s18  ;;  %p85_p1 = scmp.lt.u32.totalorder %s81_s18, %s249_s1 }
   0x7   :  { %p87_p2 = pnand %p85_p1, %p82_p0 }
   0x9   :  { %90 = shalt.err (!%p87_p2)
}
   0xa   :  { %s91_s23 = scalar_lea.vmem %s28_s13, 128  ;;  %p96_p4 = scmp.lt.s32.totalorder %s28_s13, %s28_s13 }
   0xb   :  { %p92_p3 = scmp.ne.s32.totalorder %s28_s13, %s91_s23  ;;  %p97_p5 = scmp.lt.s32.totalorder %s91_s23, %s91_s23 }
   0xd   :  { %p98_p6 = por %p97_p5, %p96_p4 }
   0xf   :  { %p99_p7 = pnand %p98_p6, %p92_p3 }
  0x11   :  { %102 = shalt.err (!%p99_p7)
}
  0x12   :  { %30 = dma.hbm_to_vmem [thread:$0]  %s249_s1, 128, %s28_s13, [#allocation6]  }
  0x13   :  { %s103_s28 = scalar_lea.hbm %s248_s0, 128 }
  0x14   :  { %p104_p8 = scmp.ne.s32.totalorder %s248_s0, %s103_s28  ;;  %p107_p9 = scmp.lt.u32.totalorder %s103_s28, %s248_s0 }
  0x16   :  { %p109_p10 = pnand %p107_p9, %p104_p8 }
  0x18   :  { %112 = shalt.err (!%p109_p10)
}
  0x19   :  { %s113_s6 = scalar_lea.vmem %s18_s15, 128  ;;  %p118_p12 = scmp.lt.s32.totalorder %s18_s15, %s18_s15 }
  0x1a   :  { %p114_p11 = scmp.ne.s32.totalorder %s18_s15, %s113_s6  ;;  %p119_p13 = scmp.lt.s32.totalorder %s113_s6, %s113_s6 }
  0x1c   :  { %p120_p0 = por %p119_p13, %p118_p12 }
  0x1e   :  { %p121_p1 = pnand %p120_p0, %p114_p11 }
  0x20   :  { %124 = shalt.err (!%p121_p1)
}
  0x21   :  { %20 = dma.hbm_to_vmem [thread:$0]  %s248_s0, 128, %s18_s15, [#allocation3]  }
  0x22   :  { %s177_s8 = smov [#allocation7]   ;;  %s125_s12 = scalar_lea.hbm %s250_s2, 128 }
  0x23   :  { %s37_s9 = sshll.u32 %s177_s8, 4  ;;  %p126_p2 = scmp.ne.s32.totalorder %s250_s2, %s125_s12  ;;  %s38_s9 = int_to_ptr.vmem [resolvable:$true] %s37_s9 }
  0x24   :  { %p129_p3 = scmp.lt.u32.totalorder %s125_s12, %s250_s2 }
  0x26   :  { %p131_p4 = pnand %p129_p3, %p126_p2 }
  0x28   :  { %134 = shalt.err (!%p131_p4)
}
  0x29   :  { %s135_s18 = scalar_lea.vmem %s38_s9, 128  ;;  %p140_p6 = scmp.lt.s32.totalorder %s38_s9, %s38_s9 }
  0x2a   :  { %p136_p5 = scmp.ne.s32.totalorder %s38_s9, %s135_s18  ;;  %p141_p7 = scmp.lt.s32.totalorder %s135_s18, %s135_s18 }
  0x2c   :  { %p142_p8 = por %p141_p7, %p140_p6 }
  0x2e   :  { %p143_p9 = pnand %p142_p8, %p136_p5 }
  0x30   :  { %146 = shalt.err (!%p143_p9)
}
  0x31   :  { %40 = dma.hbm_to_vmem [thread:$0]  %s250_s2, 128, %s38_s9, [#allocation6]  }
  0x32   :  { %169 = dma.done.wait [#allocation3], 128  }
  0x33   :  { %170 = vsyncadd [#allocation3], 4294967168 }
  0x34   :  { %171 = dma.done.wait [#allocation6], 256  }
  0x35   :  { %172 = vsyncadd [#allocation6], 4294967040  ;;  %v50_v0 = vld [vmem:[#allocation2] sm:$0xff]  ;;  %v51_v1 = vld [vmem:[#allocation5] sm:$0xff]  ;;  %v178_v4 = vmov 0.3  }
  0x36   :  { %v54_v2 = vld [vmem:[#allocation7] sm:$0xff]  ;;  %v52_v3 = vsub.f32 %v50_v0, %v51_v1  ;;  %s179_s19 = smov [#allocation8]  }
  0x37   :  { %vm55_vm0 = vcmp.ne.f32.partialorder %v54_v2, 0.0  ;;  %s66_s20 = sshll.u32 %s179_s19, 4  ;;  %s67_s20 = int_to_ptr.vmem [resolvable:$true] %s66_s20 }
  0x38   :  { %v56_v5 = vsel %vm55_vm0, 0.7, %v178_v4  ;;  %v53_v6 = vmul.f32 %v52_v3, %v52_v3  ;;  %s147_s21 = scalar_lea.vmem %s67_s20, 128  ;;  %p152_p11 = scmp.lt.s32.totalorder %s67_s20, %s67_s20 }
  0x39   :  { %p148_p10 = scmp.ne.s32.totalorder %s67_s20, %s147_s21  ;;  %p153_p12 = scmp.lt.s32.totalorder %s147_s21, %s147_s21 }
  0x3a   :  { %v57_v7 = vmul.f32 %v56_v5, %v53_v6 }
  0x3b   :  { %p154_p13 = por %p153_p12, %p152_p11 }
  0x3c   :  { %59 = vst [vmem:[#allocation8] sm:$0xff] %v57_v7 }
  0x3d   :  { %p155_p0 = pnand %p154_p13, %p148_p10 }
  0x3f   :  { %158 = shalt.err (!%p155_p0)
}
  0x40   :  { %s159_s23 = scalar_lea.hbm %s251_s3, 128 }
  0x41   :  { %p160_p1 = scmp.ne.s32.totalorder %s251_s3, %s159_s23  ;;  %p163_p2 = scmp.lt.u32.totalorder %s159_s23, %s251_s3 }
  0x43   :  { %p165_p3 = pnand %p163_p2, %p160_p1 }
  0x45   :  { %168 = shalt.err (!%p165_p3)
}
  0x46   :  { %69 = dma.vmem_to_hbm [thread:$0]  %s67_s20, 128, %s251_s3, [#allocation4]  }
  0x47   :  { %173 = dma.done.wait [#allocation4], 128  }
  0x48   :  { %174 = vsyncadd [#allocation4], 4294967168 }
  0x49   :  { %73 = vsyncpa [#allocation3], 1 }
  0x4a   :  { %74 = vsyncpa [#allocation6], 1 }
  0x4b   :  { %75 = vsyncpa [#allocation4], 1 }

</bundles_post_ra>
